<compile_context>
chip_gen: v7x
topology: tpu7x:2x2x1
jax: 0.10.0
libtpu: 0.0.40
codegen_flags: <defaults>
</compile_context>

<pallas_src>
import jax
import jax.numpy as jnp
from jax.experimental import pallas as pl
from jax.experimental.pallas import tpu as pltpu


def _vmem_budget_bytes():
    """Per-generation VMEM budget (v7x TensorCores have 64 MiB vs 128 MiB on v5e/v6e)."""
    phys = None
    try:
        info = pltpu.get_tpu_info()
        phys = getattr(info, "vmem_capacity_bytes", None)
    except Exception:
        phys = None
    if not phys:
        phys = 64 * 1024 * 1024  # conservative: assume the smallest (v7x)
    return min((int(phys) * 3) // 4, 96 * 1024 * 1024)


def _choose_block_h(N, H, W, Cin, Cout, vmem_budget):
    """Rows of output per grid step: aim for >= ~8 grid steps, fit the VMEM budget."""
    Kc = 3 * Cin

    def vmem_use(bh):
        x_tile = (bh + 2) * W * Kc * 2        # bf16 input tile
        o_tile = bh * W * Cout * 4            # f32 output tile
        w_res = 3 * Kc * Cout * 2             # bf16 weight slab (resident)
        return 2 * (x_tile + o_tile) + 2 * w_res   # double-buffered

    blocks_per_image = max(1, -(-8 // N))     # ceil(8 / N)
    bh = max(1, -(-H // blocks_per_image))    # ceil(H / blocks_per_image)
    bh = min(bh, H)
    while bh > 1 and vmem_use(bh) > vmem_budget // 2:
        bh = max(1, bh // 2)
    return bh


def _make_kernel(block_h, W):
    rows = block_h * W

    def kernel(x_ref, w_ref, o_ref):
        # x_ref: (1, (block_h+2)*W, 3*Cin) bf16 -- kw-im2col rows with a 2-row halo
        # w_ref: (3, 3*Cin, Cout)          bf16 -- per-kh weight matrices (resident)
        # o_ref: (1, block_h*W, Cout)      x.dtype
        x = x_ref[0]                  # ((block_h+2)*W, 3*Cin)
        w = w_ref[...]                # (3, 3*Cin, Cout)
        # Three kh taps = static sublane slices of the same resident block; each is a
        # K = 3*Cin contraction on the MXU, accumulated in f32.
        acc = jnp.dot(x[0:rows], w[0], preferred_element_type=jnp.float32)
        acc = acc + jnp.dot(x[W:W + rows], w[1], preferred_element_type=jnp.float32)
        acc = acc + jnp.dot(x[2 * W:2 * W + rows], w[2], preferred_element_type=jnp.float32)
        o_ref[0] = jnp.maximum(acc, 0.0).astype(o_ref.dtype)

    return kernel


def esn_conv2d(x_nchw, weight_oihw, *, block_h=None):
    """Forward pass of ESNConv2d (3x3 conv, padding=1, bias=False, zeros) + ReLU.

    x_nchw:      (N, Cin, H, W)    -- PyTorch NCHW input
    weight_oihw: (Cout, Cin, 3, 3) -- PyTorch Conv2d weight, bias=False
    returns:     (N, Cout, H, W)
    """
    N, Cin, H, W = x_nchw.shape
    Cout = weight_oihw.shape[0]
    Kc = 3 * Cin
    out_dtype = x_nchw.dtype

    vmem_budget = _vmem_budget_bytes()
    if block_h is None:
        block_h = _choose_block_h(N, H, W, Cin, Cout, vmem_budget)
    n_hb = -(-H // block_h)                 # ceil(H / block_h)
    Hp = n_hb * block_h
    G = N * n_hb                            # grid steps (all independent -> 'parallel')
    rows_in = (block_h + 2) * W
    rows_out = block_h * W

    # ---- wrapper-side layout glue (all reshapes/transposes/padding outside the kernel) ----
    # NCHW -> NHWC, cast to bf16 early so every materialized intermediate is half-size.
    x_nhwc = jnp.transpose(x_nchw, (0, 2, 3, 1)).astype(jnp.bfloat16)
    # 'zeros' padding (padding=1); extra zero rows below pad H up to Hp (their outputs
    # are computed but sliced off afterwards).
    x_pad = jnp.pad(x_nhwc, ((0, 0), (1, 1 + (Hp - H)), (1, 1), (0, 0)))
    # Width-only im2col (3x, not 9x): xw[n, h', w, kw*Cin+ci] = x_pad[n, h', w+kw, ci]
    xw = jnp.concatenate([x_pad[:, :, kw:kw + W, :] for kw in range(3)], axis=-1)
    # Overlapping row blocks with a 2-row halo, flattened to (G, (block_h+2)*W, 3*Cin).
    xb = jnp.stack([xw[:, hb * block_h: hb * block_h + block_h + 2]
                    for hb in range(n_hb)], axis=1)
    xb = xb.reshape(G, rows_in, Kc)

    # Weight OIHW -> (kh, kw, Cin, Cout) -> (3, 3*Cin, Cout); (kw outer, ci inner)
    # matches the xw channel layout above.
    w3 = jnp.transpose(weight_oihw, (2, 3, 1, 0)).reshape(3, Kc, Cout).astype(jnp.bfloat16)

    cost = pl.CostEstimate(
        flops=2 * G * rows_out * Kc * Cout * 3,
        transcendentals=0,
        bytes_accessed=(xb.size * xb.dtype.itemsize
                        + w3.size * w3.dtype.itemsize
                        + G * rows_out * Cout * jnp.dtype(out_dtype).itemsize),
    )

    out_blk = pl.pallas_call(
        _make_kernel(block_h, W),
        out_shape=jax.ShapeDtypeStruct((G, rows_out, Cout), out_dtype),
        grid=(G,),
        in_specs=[
            pl.BlockSpec((1, rows_in, Kc), lambda g: (g, 0, 0)),
            # Constant index_map -> weight slab stays resident in VMEM across the grid.
            pl.BlockSpec((3, Kc, Cout), lambda g: (0, 0, 0)),
        ],
        out_specs=pl.BlockSpec((1, rows_out, Cout), lambda g: (g, 0, 0)),
        compiler_params=pltpu.CompilerParams(
            dimension_semantics=("parallel",),
            vmem_limit_bytes=vmem_budget,
        ),
        cost_estimate=cost,
    )(xb, w3)

    # Unpack (G, block_h*W, Cout) -> NCHW in the wrapper (not in kernel).
    out = out_blk.reshape(N, Hp, W, Cout)[:, :H]
    return jnp.transpose(out, (0, 3, 1, 2))


if __name__ == "__main__":
    # Small shapes consistent with the module's forward: NCHW input.
    N, Cin, Cout, H, W = 2, 4, 8, 16, 16

    key = jax.random.PRNGKey(0)
    k_x, k_w = jax.random.split(key)

    x = jax.random.normal(k_x, (N, Cin, H, W), dtype=jnp.float32)

    # Deterministic Conv2d-style init: uniform(-b, b), b = 1/sqrt(Cin*3*3).
    fan_in = Cin * 3 * 3
    bound = 1.0 / (fan_in ** 0.5)
    weight = jax.random.uniform(k_w, (Cout, Cin, 3, 3),
                                minval=-bound, maxval=bound,
                                dtype=jnp.float32)

    out = esn_conv2d(x, weight)
    out = jax.block_until_ready(out)

    # Reference: XLA conv (3x3, SAME, no bias) + ReLU on the same bf16-rounded inputs
    # (the kernel feeds the MXU bf16 operands with f32 accumulation).
    x_b = x.astype(jnp.bfloat16).astype(jnp.float32)
    w_b = weight.astype(jnp.bfloat16).astype(jnp.float32)
    ref = jax.lax.conv_general_dilated(
        x_b, w_b, window_strides=(1, 1), padding="SAME",
        dimension_numbers=("NCHW", "OIHW", "NCHW"),
        precision=jax.lax.Precision.HIGHEST)
    ref = jnp.maximum(ref, 0.0)

    assert out.shape == (N, Cout, H, W)
    assert jnp.allclose(out, ref, atol=2e-3, rtol=2e-3), \
        float(jnp.max(jnp.abs(out - ref)))

    print("KERNEL_OK")
</pallas_src>

<mosaic_0001>
module attributes {stable_mosaic.version = 11 : i64} {
  func.func @kernel(%arg0: i32, %arg1: memref<1x96x12xbf16, #tpu.memory_space<vmem>>, %arg2: memref<3x12x8xbf16, #tpu.memory_space<vmem>>, %arg3: memref<1x64x8xf32, #tpu.memory_space<vmem>>) attributes {dimension_semantics = [#tpu.dimension_semantics<parallel>], iteration_bounds = array<i64: 8>, scalar_prefetch = 0 : i64, scratch_operands = 0 : i64, tpu.core_type = #tpu.core_type<tc>, window_params = [{transform_indices = @transform_0, window_bounds = array<i64: 1, 96, 12>}, {pipeline_mode = #tpu.pipeline_mode<synchronous>, transform_indices = @transform_1, window_bounds = array<i64: 3, 12, 8>}, {transform_indices = @transform_2, window_bounds = array<i64: 1, 64, 8>}]} {
    %c0 = arith.constant 0 : index
    %c0_0 = arith.constant 0 : index
    %c0_1 = arith.constant 0 : index
    %0 = vector.load %arg1[%c0, %c0_0, %c0_1] : memref<1x96x12xbf16, #tpu.memory_space<vmem>>, vector<1x96x12xbf16>
    %1 = vector.shape_cast %0 : vector<1x96x12xbf16> to vector<96x12xbf16>
    %c0_2 = arith.constant 0 : index
    %c0_3 = arith.constant 0 : index
    %c0_4 = arith.constant 0 : index
    %2 = vector.load %arg2[%c0_2, %c0_3, %c0_4] : memref<3x12x8xbf16, #tpu.memory_space<vmem>>, vector<3x12x8xbf16>
    %3 = vector.extract_strided_slice %1 {offsets = [0, 0], sizes = [64, 12], strides = [1, 1]} : vector<96x12xbf16> to vector<64x12xbf16>
    %4 = vector.extract_strided_slice %2 {offsets = [0, 0, 0], sizes = [1, 12, 8], strides = [1, 1, 1]} : vector<3x12x8xbf16> to vector<1x12x8xbf16>
    %5 = vector.shape_cast %4 : vector<1x12x8xbf16> to vector<12x8xbf16>
    %cst = arith.constant dense<0.000000e+00> : vector<64x8xf32>
    %6 = tpu.matmul %3, %5, %cst {dimension_numbers = #tpu.dot_dimension_numbers<[1], [0], [0], [1], [0, 0, 1, 1], [], []>} : vector<64x12xbf16>, vector<12x8xbf16>, vector<64x8xf32> -> vector<64x8xf32>
    %7 = vector.extract_strided_slice %1 {offsets = [16, 0], sizes = [64, 12], strides = [1, 1]} : vector<96x12xbf16> to vector<64x12xbf16>
    %8 = vector.extract_strided_slice %2 {offsets = [1, 0, 0], sizes = [1, 12, 8], strides = [1, 1, 1]} : vector<3x12x8xbf16> to vector<1x12x8xbf16>
    %9 = vector.shape_cast %8 : vector<1x12x8xbf16> to vector<12x8xbf16>
    %cst_5 = arith.constant dense<0.000000e+00> : vector<64x8xf32>
    %10 = tpu.matmul %7, %9, %cst_5 {dimension_numbers = #tpu.dot_dimension_numbers<[1], [0], [0], [1], [0, 0, 1, 1], [], []>} : vector<64x12xbf16>, vector<12x8xbf16>, vector<64x8xf32> -> vector<64x8xf32>
    %11 = arith.addf %6, %10 : vector<64x8xf32>
    %12 = vector.extract_strided_slice %1 {offsets = [32, 0], sizes = [64, 12], strides = [1, 1]} : vector<96x12xbf16> to vector<64x12xbf16>
    %13 = vector.extract_strided_slice %2 {offsets = [2, 0, 0], sizes = [1, 12, 8], strides = [1, 1, 1]} : vector<3x12x8xbf16> to vector<1x12x8xbf16>
    %14 = vector.shape_cast %13 : vector<1x12x8xbf16> to vector<12x8xbf16>
    %cst_6 = arith.constant dense<0.000000e+00> : vector<64x8xf32>
    %15 = tpu.matmul %12, %14, %cst_6 {dimension_numbers = #tpu.dot_dimension_numbers<[1], [0], [0], [1], [0, 0, 1, 1], [], []>} : vector<64x12xbf16>, vector<12x8xbf16>, vector<64x8xf32> -> vector<64x8xf32>
    %16 = arith.addf %11, %15 : vector<64x8xf32>
    %cst_7 = arith.constant 0.000000e+00 : f32
    %17 = vector.broadcast %cst_7 : f32 to vector<64x8xf32>
    %18 = arith.maximumf %16, %17 : vector<64x8xf32>
    %c0_8 = arith.constant 0 : index
    %c0_9 = arith.constant 0 : index
    %c0_10 = arith.constant 0 : index
    %19 = vector.load %arg3[%c0_8, %c0_9, %c0_10] : memref<1x64x8xf32, #tpu.memory_space<vmem>>, vector<1x64x8xf32>
    %20 = vector.shape_cast %19 : vector<1x64x8xf32> to vector<64x8xf32>
    %21 = vector.shape_cast %18 : vector<64x8xf32> to vector<1x64x8xf32>
    tpu.vector_store %arg3[%c0_8, %c0_9, %c0_10], %21 {strides = array<i32>} : memref<1x64x8xf32, #tpu.memory_space<vmem>>, vector<1x64x8xf32>,
    return
  }
  func.func @transform_0(%arg0: i32) -> (i32, i32, i32) {
    %c0_i32 = arith.constant 0 : i32
    %c0_i32_0 = arith.constant 0 : i32
    %c0_i32_1 = arith.constant 0 : i32
    return %arg0, %c0_i32, %c0_i32_0 : i32, i32, i32
  }
  func.func @transform_1(%arg0: i32) -> (i32, i32, i32) {
    %c0_i32 = arith.constant 0 : i32
    %c0_i32_0 = arith.constant 0 : i32
    %c0_i32_1 = arith.constant 0 : i32
    %c0_i32_2 = arith.constant 0 : i32
    return %c0_i32, %c0_i32_0, %c0_i32_1 : i32, i32, i32
  }
  func.func @transform_2(%arg0: i32) -> (i32, i32, i32) {
    %c0_i32 = arith.constant 0 : i32
    %c0_i32_0 = arith.constant 0 : i32
    %c0_i32_1 = arith.constant 0 : i32
    return %arg0, %c0_i32, %c0_i32_0 : i32, i32, i32
  }
}

</mosaic_0001>

<bundles_post_ra>
// kernel: tpu_custom_call.1
= control target key start
LH: loop header
LB: loop body
LE: loop exit
PB: predicated region body
PF: predicated region fallthrough
CT: control target
= control target key end

     0   :  { %s652_s9 = smov 0   ;;  %s719_s0 = inlined_call_operand.vmem [shape: bf16[8,96,12], index: 0, kind: input, shape index: {}]   ;;  %s720_s1 = inlined_call_operand.vmem [shape: bf16[3,12,8], index: 1, kind: input, shape index: {}]   ;;  %s721_s2 = inlined_call_operand.vmem [shape: f32[8,64,8], index: 2, kind: output, shape index: {}]  }
   0x1 LB: > { %s512_s10 = sadd.s32 4294967295, %s635_s9   ;;  %p516_p0 = scmp.ge.s32.totalorder %s635_s9, 1  ;;  %s635_s9 = sphi %s652_s9, %s12_s9  }
   0x2   : > { %p112_p1 = scmp.lt.s32.totalorder %s635_s9, 9 }
   0x4   : > { %p113_p2 = pnand %p516_p0, %p112_p1 }
   0x5   : > { %v620_v0 = vld [vmem:[%s720_s1 + $0x8] sm:$0x3f] (!%p113_p2)   ;;  %vm201_vm0 = vcmask (!%p113_p2), 1045504   ;;  %p134_p3 = scmp.lt.s32.totalorder (!%p113_p2), %s512_s10, 7  ;;  %v621_v1 = vld [vmem:[%s720_s1] sm:$0x3f] (!%p113_p2)  }
   0x6   : > { %116 = sbr.rel (%p113_p2) target bundleno = 259 (0x103), region = 28  ;;  %607 = vmatprep.subr.msk.bf16.mxu1 (!%p113_p2), %vm201_vm0, %v620_v0  ;;  %v203_v2 = vsel (!%p113_p2), %vm201_vm0, %v620_v0, 0  ;;  %v624_v3 = vld [vmem:[%s720_s1 + $0x10] sm:$0x3f] (!%p113_p2)   ;;  %608 = vmatprep.subr.msk.bf16.mxu0 (!%p113_p2), %vm201_vm0, %v621_v1  ;;  %v284_v4 = vsel (!%p113_p2), %vm201_vm0, %v621_v1, 0  ;;  %vm188_vm1 = vcmask (!%p113_p2), 97280  }
   0x7   : > { %560 = vmatpush3.bf16.msra.mxu1 (!%p113_p2), %v203_v2  ;;  %570 = vmatpush3.bf16.msra.mxu0 (!%p113_p2), %v284_v4  ;;  %v365_v8 = vsel (!%p113_p2), %vm201_vm0, %v624_v3, 0  ;;  %vm448_vm2 = vcmask (!%p113_p2), 64512  }
   0x8   : > { %609 = vmatprep.subr.msk.bf16.mxu1 (!%p113_p2), %vm201_vm0, %v621_v1  ;;  %610 = vmatprep.subr.msk.bf16.mxu0 (!%p113_p2), %vm201_vm0, %v624_v3 }
   0xd   : > { %s723_s10 = smov (!%p134_p3, %s512_s10), 7 }
   0xe   : > { %s611_s17 = smul.u32 48, %s723_s10  ;;  %s543_s21 = sshll.u32 %s723_s10, 6 }
   0xf   : > { %s698_s24 = scalar_lea.vmem %s721_s2, %s543_s21 }
  0x10   : > { %s138_s20 = scalar_lea.vmem %s719_s0, %s611_s17 }
  0x11   : > { %v622_v5 = vld [vmem:[%s138_s20 + $0x8] sm:$0xff]   ;;  %v623_v6 = vld [vmem:[%s138_s20] sm:$0xff]   ;;  %v625_v7 = vld [vmem:[%s138_s20 + $0x10] sm:$0xff]  }
  0x12   : > { %561 = vmatprep.mubr.msk.bf16.mxu1 %vm188_vm1, %v622_v5  ;;  %571 = vmatprep.mubr.msk.bf16.mxu0 %vm188_vm1, %v623_v6  ;;  %v626_v9 = vld [vmem:[%s138_s20 + $0x18] sm:$0xff]   ;;  %v627_v10 = vld [vmem:[%s138_s20 + $0x20] sm:$0xff]   ;;  %v628_v11 = vld [vmem:[%s138_s20 + $0x28] sm:$0xff]  }
  0x13   : > { %562 = vmatmul.mubr.msk.bf16.vlgmr.msra.gmra.mrb[0].mxu1 %vm188_vm1, %v625_v7  ;;  %572 = vmatmul.mubr.msk.bf16.vlgmr.msra.gmra.mrb[0].mxu0 %vm188_vm1, %v622_v5 }
  0x14   : > { %590 = vmatpush3.bf16.msra.mxu1 %v284_v4  ;;  %580 = vmatpush3.bf16.msra.mxu0 %v365_v8 }
  0x15   : > { %565 = vmatprep.mubr.msk.bf16.mxu1 %vm188_vm1, %v626_v9  ;;  %581 = vmatprep.mubr.msk.bf16.mxu0 %vm188_vm1, %v625_v7 }
  0x1b   : > { %566 = vmatmul.mubr.msk.bf16.gmra.mrb[4].mxu1 %vm188_vm1, %v627_v10 }
  0x1c   : > { %575 = vmatprep.mubr.msk.bf16.mxu1 %vm188_vm1, %v625_v7 }
  0x1f   : > { %582 = vmatmul.mubr.msk.bf16.vlgmr.msra.gmra.mrb[0].mxu0 %vm188_vm1, %v626_v9 }
  0x20   : > { %585 = vmatprep.mubr.msk.bf16.mxu0 %vm188_vm1, %v627_v10 }
  0x27   : > { %576 = vmatmul.mubr.msk.bf16.vlgmr.msra.gmra.mrb[4].mxu1 %vm188_vm1, %v626_v9  ;;  %586 = vmatmul.mubr.msk.bf16.gmra.mrb[4].mxu0 %vm188_vm1, %v628_v11 }
  0xe6   : > { %v563_v12 = vpop.f32.mrb[0].mxu1 }
  0xe7   : > { %v239_v13 = vpop.f32.mrb[1].mxu1 }
  0xe8   : > { %v564_v14 = vpop.f32.mrb[2].mxu1 }
  0xe9   : > { %v242_v15 = vpop.f32.mrb[3].mxu1 }
  0xf2   : > { %v583_v16 = vpop.f32.mrb[0].mxu0 }
  0xf3   : > { %v591_v17 = vadd.f32 %v583_v16, %v563_v12  ;;  %v401_v18 = vpop.f32.mrb[1].mxu0 }
  0xf4   : > { %v592_v19 = vadd.f32 %v401_v18, %v239_v13  ;;  %v584_v20 = vpop.f32.mrb[2].mxu0 }
  0xf5   : > { %v442_v21 = vmax.f32 %v591_v17, 0.0  ;;  %v593_v22 = vadd.f32 %v584_v20, %v564_v14  ;;  %v404_v23 = vpop.f32.mrb[3].mxu0 }
  0xf6   : > { %v440_v24 = vmax.f32 %v592_v19, 0.0  ;;  %v594_v25 = vadd.f32 %v404_v23, %v242_v15 }
  0xf7   : > { %451 = vst.msk [vmem:[%s698_s24 + $0x10] sm:$0xff] %vm448_vm2, %v442_v21  ;;  %v443_v26 = vmax.f32 %v593_v22, 0.0 }
  0xf8   : > { %449 = vst.msk [vmem:[%s698_s24] sm:$0xff] %vm448_vm2, %v440_v24  ;;  %v441_v27 = vmax.f32 %v594_v25, 0.0 }
  0xf9   : > { %452 = vst.msk [vmem:[%s698_s24 + $0x18] sm:$0xff] %vm448_vm2, %v443_v26 }
  0xfa   : > { %450 = vst.msk [vmem:[%s698_s24 + $0x8] sm:$0xff] %vm448_vm2, %v441_v27  ;;  %v577_v28 = vpop.f32.mrb[4].mxu1  ;;  %v587_v29 = vpop.f32.mrb[4].mxu0 }
  0xfb   : > { %v595_v30 = vadd.f32 %v587_v29, %v577_v28  ;;  %v336_v31 = vpop.f32.mrb[5].mxu1  ;;  %v417_v32 = vpop.f32.mrb[5].mxu0 }
  0xfc   : > { %v596_v33 = vadd.f32 %v417_v32, %v336_v31  ;;  %v578_v34 = vpop.f32.mrb[6].mxu1  ;;  %v588_v35 = vpop.f32.mrb[6].mxu0 }
  0xfd   : > { %v446_v36 = vmax.f32 %v595_v30, 0.0  ;;  %v597_v37 = vadd.f32 %v588_v35, %v578_v34  ;;  %v339_v38 = vpop.f32.mrb[7].mxu1  ;;  %v420_v39 = vpop.f32.mrb[7].mxu0 }
  0xfe   : > { %v444_v40 = vmax.f32 %v596_v33, 0.0  ;;  %v598_v41 = vadd.f32 %v420_v39, %v339_v38 }
  0xff   : > { %455 = vst.msk [vmem:[%s698_s24 + $0x30] sm:$0xff] %vm448_vm2, %v446_v36  ;;  %v447_v42 = vmax.f32 %v597_v37, 0.0 }
 0x100   : > { %453 = vst.msk [vmem:[%s698_s24 + $0x20] sm:$0xff] %vm448_vm2, %v444_v40  ;;  %v445_v43 = vmax.f32 %v598_v41, 0.0 }
 0x101   : > { %456 = vst.msk [vmem:[%s698_s24 + $0x38] sm:$0xff] %vm448_vm2, %v447_v42 }
 0x102   : > { %454 = vst.msk [vmem:[%s698_s24 + $0x28] sm:$0xff] %vm448_vm2, %v445_v43 }
 0x103 PF: > { %s12_s9 = sadd.s32 1, %s635_s9  }
 0x104   : > { %p9_p4 = scmp.ge.s32.totalorder %s12_s9, 10  }
 0x106   :  { %11 = sbr.rel (!%p9_p4) target bundleno = 1 (0x1), region = 58 }

</bundles_post_ra>
